<compile_context>
chip_gen: v7x
topology: tpu7x:2x2x1
jax: 0.10.0
libtpu: 0.0.40
codegen_flags: <defaults>
</compile_context>

<pallas_src>
import jax
import jax.numpy as jnp
from jax import lax
from jax.experimental import pallas as pl
from jax.experimental.pallas import tpu as pltpu


def _lateral_merge_kernel(fm_ref, x_ref, w_ref, b_ref, o_ref, *, precision):
    # fm_ref: (TH, W, Cin), x_ref: (TH//2, W//2, Cout),
    # w_ref: (Cin, Cout), b_ref: (1, Cout), o_ref: (TH, W, Cout)
    TH, W, Cin = fm_ref.shape
    Th, Wh, Cout = x_ref.shape

    # 1x1 conv == per-pixel matmul over channels (MXU hot path), f32 accumulation.
    fm_flat = fm_ref[...].reshape(TH * W, Cin)
    lat = jnp.dot(
        fm_flat, w_ref[...],
        preferred_element_type=jnp.float32,
        precision=precision,
    )
    lat = lat + b_ref[...]                     # single tile-wide bias add, (1, Cout) -> rows
    lat = lat.reshape(Th, 2, W, Cout)          # output rows grouped as (source row, parity)

    # Nearest-neighbor 2x upsample with row-pair reuse:
    #   1) duplicate along W once, on the half-height slab (only cross-sublane step)
    #   2) broadcast that slab over the parity dim so both output rows of a pair share it.
    xb = x_ref[...].astype(jnp.float32)                                        # (Th, Wh, Cout)
    x_wide = jnp.broadcast_to(xb[:, :, None, :], (Th, Wh, 2, Cout)).reshape(Th, W, Cout)
    out = lat + x_wide[:, None, :, :]                                          # (Th, 2, W, Cout)

    o_ref[...] = out.reshape(TH, W, Cout).astype(o_ref.dtype)


def _choose_row_tile(H, W, Cin, Cout, itemsize, budget_bytes):
    """Pick an even row-tile TH dividing H so the double-buffered working set
    (fm tile + out tile + half an x tile, x2 buffers) stays under budget_bytes."""
    per_row = 2 * itemsize * (W * Cin + W * Cout + max(1, (W // 2) * Cout // 2))
    th = max(2, min(H, budget_bytes // max(per_row, 1)))
    th -= th % 2                       # even, so each tile holds whole row-pairs
    th = max(th, 2)
    while H % th:                      # must evenly divide H (H is always even here)
        th -= 2
    return max(th, 2)


def lateral_upsample_merge(
    x,
    feature_map,
    weight,
    bias,
    *,
    row_tile=None,
    compute_dtype=None,
    tile_budget_bytes=32 * 1024 * 1024,   # double-buffered working-set budget (v7x-safe)
    vmem_limit_bytes=48 * 1024 * 1024,
):
    """x: (N, H/2, W/2, Cout), feature_map: (N, H, W, Cin),
    weight: (Cin, Cout), bias: (1, Cout)  ->  (N, H, W, Cout) in x.dtype."""
    N, Hh, Wh, Cout = x.shape
    Nf, H, W, Cin = feature_map.shape
    assert Nf == N and H == 2 * Hh and W == 2 * Wh
    assert weight.shape == (Cin, Cout) and bias.shape == (1, Cout)

    out_dtype = x.dtype
    if compute_dtype is not None:
        # Memory-bound op: bf16 inputs halve HBM traffic (v6e/v7x); matmul still f32-acc.
        feature_map = feature_map.astype(compute_dtype)
        x = x.astype(compute_dtype)
        weight = weight.astype(compute_dtype)
        precision = lax.Precision.DEFAULT          # native bf16 MXU pass
    else:
        precision = lax.Precision.HIGHEST          # f32-faithful 1x1 conv (matches PyTorch)

    itemsize = jnp.dtype(feature_map.dtype).itemsize
    TH = row_tile if row_tile is not None else _choose_row_tile(
        H, W, Cin, Cout, itemsize, tile_budget_bytes)
    assert TH % 2 == 0 and H % TH == 0, (TH, H)
    # NOTE: W % 8 == 0 and Cout % 128 == 0 keep the reshapes layout-free and the output
    # store lane-dense (biggest measured lever); other sizes are still correct.

    grid = (N, H // TH)

    kernel = lambda *refs: _lateral_merge_kernel(*refs, precision=precision)

    return pl.pallas_call(
        kernel,
        out_shape=jax.ShapeDtypeStruct((N, H, W, Cout), out_dtype),
        grid=grid,
        in_specs=[
            pl.BlockSpec((None, TH, W, Cin), lambda n, t: (n, t, 0, 0)),
            pl.BlockSpec((None, TH // 2, Wh, Cout), lambda n, t: (n, t, 0, 0)),
            # Constant index_maps: weight/bias are fetched once and stay resident.
            pl.BlockSpec((Cin, Cout), lambda n, t: (0, 0)),
            pl.BlockSpec((1, Cout), lambda n, t: (0, 0)),
        ],
        out_specs=pl.BlockSpec((None, TH, W, Cout), lambda n, t: (n, t, 0, 0)),
        compiler_params=pltpu.CompilerParams(
            dimension_semantics=("parallel", "parallel"),
            vmem_limit_bytes=vmem_limit_bytes,
        ),
    )(feature_map, x, weight, bias)


def _reference(x, feature_map, weight, bias):
    # Pure-JAX reference of the PyTorch forward (in NHWC), f32-faithful matmul.
    lat = jnp.einsum("nhwc,cd->nhwd", feature_map, weight,
                     precision=lax.Precision.HIGHEST) + bias[0]
    up = jnp.repeat(jnp.repeat(x, 2, axis=1), 2, axis=2)
    return lat + up


if __name__ == "__main__":
    key = jax.random.PRNGKey(0)
    k_fm, k_x, k_w, k_b = jax.random.split(key, 4)

    N = 2
    in_channels = 64     # Cin of feature_map
    out_channels = 128   # Cout (lane-dense output; matches channels of x and output)
    H = W = 16           # feature_map spatial; x is H/2 x W/2

    feature_map = jax.random.normal(k_fm, (N, H, W, in_channels), dtype=jnp.float32)
    x = jax.random.normal(k_x, (N, H // 2, W // 2, out_channels), dtype=jnp.float32)

    # Deterministic synthetic conv1x1 parameters (PyTorch weight (Cout,Cin,1,1) stored as (Cin,Cout)).
    weight = jax.random.normal(k_w, (in_channels, out_channels), dtype=jnp.float32) * 0.1
    bias = jax.random.normal(k_b, (1, out_channels), dtype=jnp.float32) * 0.01

    ref = _reference(x, feature_map, weight, bias)

    # f32 path, explicit small row tile so the (N, H//TH) grid is exercised.
    out = lateral_upsample_merge(x, feature_map, weight, bias, row_tile=8)
    out = jax.block_until_ready(out)
    assert out.shape == (N, H, W, out_channels)
    assert jnp.allclose(out, ref, atol=1e-4, rtol=1e-4), "f32 mismatch vs reference"

    # bf16-input path (memory-bound optimization for v6e/v7x); f32 accumulation, looser tol.
    out_bf16 = lateral_upsample_merge(
        x, feature_map, weight, bias, row_tile=8, compute_dtype=jnp.bfloat16)
    out_bf16 = jax.block_until_ready(out_bf16)
    assert jnp.allclose(out_bf16, ref, atol=5e-2, rtol=5e-2), "bf16 mismatch vs reference"

    print("KERNEL_OK")
</pallas_src>

<mosaic_0001>
module attributes {stable_mosaic.version = 11 : i64} {
  func.func @_lambda_(%arg0: i32, %arg1: i32, %arg2: memref<1x8x16x64xf32, #tpu.memory_space<vmem>>, %arg3: memref<1x4x8x128xf32, #tpu.memory_space<vmem>>, %arg4: memref<64x128xf32, #tpu.memory_space<vmem>>, %arg5: memref<1x128xf32, #tpu.memory_space<vmem>>, %arg6: memref<1x8x16x128xf32, #tpu.memory_space<vmem>>) attributes {dimension_semantics = [#tpu.dimension_semantics<parallel>, #tpu.dimension_semantics<parallel>], iteration_bounds = array<i64: 2, 2>, scalar_prefetch = 0 : i64, scratch_operands = 0 : i64, tpu.core_type = #tpu.core_type<tc>, window_params = [{transform_indices = @transform_0, window_bounds = array<i64: 1, 8, 16, 64>}, {transform_indices = @transform_1, window_bounds = array<i64: 1, 4, 8, 128>}, {pipeline_mode = #tpu.pipeline_mode<synchronous>, transform_indices = @transform_2, window_bounds = array<i64: 64, 128>}, {pipeline_mode = #tpu.pipeline_mode<synchronous>, transform_indices = @transform_3, window_bounds = array<i64: 1, 128>}, {transform_indices = @transform_4, window_bounds = array<i64: 1, 8, 16, 128>}]} {
    %c0 = arith.constant 0 : index
    %c0_0 = arith.constant 0 : index
    %c0_1 = arith.constant 0 : index
    %c0_2 = arith.constant 0 : index
    %0 = vector.load %arg2[%c0, %c0_0, %c0_1, %c0_2] : memref<1x8x16x64xf32, #tpu.memory_space<vmem>>, vector<1x8x16x64xf32>
    %1 = vector.shape_cast %0 : vector<1x8x16x64xf32> to vector<8x16x64xf32>
    %2 = vector.shape_cast %1 : vector<8x16x64xf32> to vector<128x64xf32>
    %c0_3 = arith.constant 0 : index
    %c0_4 = arith.constant 0 : index
    %3 = vector.load %arg4[%c0_3, %c0_4] : memref<64x128xf32, #tpu.memory_space<vmem>>, vector<64x128xf32>
    %cst = arith.constant dense<0.000000e+00> : vector<128x128xf32>
    %4 = tpu.matmul %2, %3, %cst {dimension_numbers = #tpu.dot_dimension_numbers<[1], [0], [0], [1], [0, 0, 1, 1], [], []>, precision = #tpu.contract_precision<fp32>} : vector<128x64xf32>, vector<64x128xf32>, vector<128x128xf32> -> vector<128x128xf32>
    %c0_5 = arith.constant 0 : index
    %c0_6 = arith.constant 0 : index
    %5 = vector.load %arg5[%c0_5, %c0_6] : memref<1x128xf32, #tpu.memory_space<vmem>>, vector<1x128xf32>
    %6 = vector.broadcast %5 : vector<1x128xf32> to vector<128x128xf32>
    %7 = arith.addf %4, %6 : vector<128x128xf32>
    %8 = vector.shape_cast %7 : vector<128x128xf32> to vector<4x2x16x128xf32>
    %c0_7 = arith.constant 0 : index
    %c0_8 = arith.constant 0 : index
    %c0_9 = arith.constant 0 : index
    %c0_10 = arith.constant 0 : index
    %9 = vector.load %arg3[%c0_7, %c0_8, %c0_9, %c0_10] : memref<1x4x8x128xf32, #tpu.memory_space<vmem>>, vector<1x4x8x128xf32>
    %10 = vector.shape_cast %9 : vector<1x4x8x128xf32> to vector<4x8x128xf32>
    %11 = vector.shape_cast %10 : vector<4x8x128xf32> to vector<4x8x1x128xf32>
    %12 = vector.shape_cast %11 : vector<4x8x1x128xf32> to vector<4x8x1x128xf32>
    %13 = vector.broadcast %12 : vector<4x8x1x128xf32> to vector<4x8x2x128xf32>
    %14 = vector.shape_cast %13 : vector<4x8x2x128xf32> to vector<4x16x128xf32>
    %15 = vector.shape_cast %14 : vector<4x16x128xf32> to vector<4x1x16x128xf32>
    %16 = vector.broadcast %15 : vector<4x1x16x128xf32> to vector<4x2x16x128xf32>
    %17 = arith.addf %8, %16 : vector<4x2x16x128xf32>
    %18 = vector.shape_cast %17 : vector<4x2x16x128xf32> to vector<8x16x128xf32>
    %c0_11 = arith.constant 0 : index
    %c0_12 = arith.constant 0 : index
    %c0_13 = arith.constant 0 : index
    %c0_14 = arith.constant 0 : index
    %19 = vector.load %arg6[%c0_11, %c0_12, %c0_13, %c0_14] : memref<1x8x16x128xf32, #tpu.memory_space<vmem>>, vector<1x8x16x128xf32>
    %20 = vector.shape_cast %19 : vector<1x8x16x128xf32> to vector<8x16x128xf32>
    %21 = vector.shape_cast %18 : vector<8x16x128xf32> to vector<1x8x16x128xf32>
    tpu.vector_store %arg6[%c0_11, %c0_12, %c0_13, %c0_14], %21 {strides = array<i32>} : memref<1x8x16x128xf32, #tpu.memory_space<vmem>>, vector<1x8x16x128xf32>,
    return
  }
  func.func @transform_0(%arg0: i32, %arg1: i32) -> (i32, i32, i32, i32) {
    %c0_i32 = arith.constant 0 : i32
    %c0_i32_0 = arith.constant 0 : i32
    %c0_i32_1 = arith.constant 0 : i32
    return %arg0, %arg1, %c0_i32, %c0_i32_0 : i32, i32, i32, i32
  }
  func.func @transform_1(%arg0: i32, %arg1: i32) -> (i32, i32, i32, i32) {
    %c0_i32 = arith.constant 0 : i32
    %c0_i32_0 = arith.constant 0 : i32
    %c0_i32_1 = arith.constant 0 : i32
    return %arg0, %arg1, %c0_i32, %c0_i32_0 : i32, i32, i32, i32
  }
  func.func @transform_2(%arg0: i32, %arg1: i32) -> (i32, i32) {
    %c0_i32 = arith.constant 0 : i32
    %c0_i32_0 = arith.constant 0 : i32
    %c0_i32_1 = arith.constant 0 : i32
    return %c0_i32, %c0_i32_0 : i32, i32
  }
  func.func @transform_3(%arg0: i32, %arg1: i32) -> (i32, i32) {
    %c0_i32 = arith.constant 0 : i32
    %c0_i32_0 = arith.constant 0 : i32
    %c0_i32_1 = arith.constant 0 : i32
    return %c0_i32, %c0_i32_0 : i32, i32
  }
  func.func @transform_4(%arg0: i32, %arg1: i32) -> (i32, i32, i32, i32) {
    %c0_i32 = arith.constant 0 : i32
    %c0_i32_0 = arith.constant 0 : i32
    %c0_i32_1 = arith.constant 0 : i32
    return %arg0, %arg1, %c0_i32, %c0_i32_0 : i32, i32, i32, i32
  }
}

</mosaic_0001>

<bundles_post_ra>
// kernel: tpu_custom_call.1
= control target key start
LH: loop header
LB: loop body
LE: loop exit
PB: predicated region body
PF: predicated region fallthrough
CT: control target
= control target key end

     0   :  { %s3964_s0 = inlined_call_operand.hbm [shape: f32[2,16,16,64], index: 0, kind: input, shape index: {}]   ;;  %s3965_s1 = inlined_call_operand.hbm [shape: f32[2,8,8,128], index: 1, kind: input, shape index: {}]   ;;  %s3966_s2 = inlined_call_operand.hbm [shape: f32[64,128], index: 2, kind: input, shape index: {}]   ;;  %s3967_s3 = inlined_call_operand.vmem [shape: f32[1,128], index: 3, kind: input, shape index: {}]   ;;  %s3968_s4 = inlined_call_operand.hbm [shape: f32[2,16,16,128], index: 4, kind: output, shape index: {}]  }
   0x1   :  { %3984 = sst [smem:[#allocation20_spill]] %s3964_s0 }
   0x2   :  { %3985 = sst [smem:[#allocation21_spill]] %s3966_s2 }
   0x3   :  { %3986 = sst [smem:[#allocation22_spill]] %s3968_s4 }
   0x4   :  { %9 = vsyncpa [#allocation3], 0 }
   0x5   :  { %11 = vsyncpa [#allocation3 + $0x1], 0 }
   0x6   :  { %12 = vsyncpa [#allocation6], 0 }
   0x7   :  { %14 = vsyncpa [#allocation6 + $0x1], 0 }
   0x8   :  { %15 = vsyncpa [#allocation4], 0 }
   0x9   :  { %17 = vsyncpa [#allocation4 + $0x1], 0  ;;  %s3148_s15 = smov 0   ;;  %s3150_s16 = smov 0  }
   0xa   :  { %s3152_s17 = smov 0   ;;  %s3154_s18 = smov 0  }
   0xb   :  { %s3156_s19 = smov 0   ;;  %s3158_s20 = smov 0  }
   0xc   :  { %s3160_s21 = smov 0   ;;  %s3162_s22 = smov 0  }
   0xd LB: > { %3987 = sst [smem:[#allocation13_spill]] %s3083_s15  ;;  %s3189_s23 = sadd.s32 4294967295, %s3111_s22   ;;  %s3111_s22 = sphi %s3162_s22, %s23_s22   ;;  %s3107_s21 = sphi %s3160_s21, %s4027_s21   ;;  %s3103_s20 = sphi %s3158_s20, %s4026_s20   ;;  %s3099_s19 = sphi %s3156_s19, %s4025_s19   ;;  %s3095_s18 = sphi %s3154_s18, %s4024_s18   ;;  %s3091_s17 = sphi %s3152_s17, %s4023_s17   ;;  %s3087_s16 = sphi %s3150_s16, %s4022_s16   ;;  %s3083_s15 = sphi %s3148_s15, %s4021_s15  }
   0xe   : > { %s2209_s24 = sadd.s32 4294967294, %s3111_s22   ;;  %p57_p0 = scmp.ne.s32.totalorder %s3087_s16, %s3083_s15 }
   0xf   : > { %p3969_p1 = scmp.eq.s32.totalorder %s3189_s23, 0  ;;  %p159_p3 = scmp.eq.s32.totalorder %s2209_s24, 3 }
  0x10   : > { %p2210_p5 = scmp.ge.s32.totalorder %s3111_s22, 1  ;;  %p166_p7 = scmp.lt.s32.totalorder %s3111_s22, 5 }
  0x11   : > { %p3198_p4 = por %p3969_p1, %p57_p0  ;;  %p3203_p6 = por %p159_p3, %p57_p0 }
  0x12   : > { %p3208_p8 = pnand %p2210_p5, %p166_p7  ;;  %s3113_s28 = smov [#allocation7]  }
  0x13   : > { %s3988_s25 = scalar_select %p3198_p4, 1, 0 }
  0x14   : > { %s3989_s26 = scalar_select %p3203_p6, 1, 0 }
  0x15   : > { %s3991_s27 = scalar_select %p3208_p8, 1, 0 }
  0x16   : > { %3990 = sst [smem:[#allocation14_spill]] %s3989_s26  ;;  %s178_s29 = sshll.u32 %s3113_s28, 4  ;;  %s179_s29 = int_to_ptr.vmem [resolvable:$true] %s178_s29 }
  0x17   : > { %p2823_p9 = pneg %p3208_p8  ;;  %s3993_s2 = sld [smem:[#allocation21_spill]] }
  0x19   : > { %p3216_p10 = pnand %p2823_p9, %p3969_p1 }
  0x1b   : > { %p2919_p12 = pneg %p3216_p10 }
  0x1d   : > { %s2917_s7 = scalar_lea.hbm %s3993_s2, 1024 }
  0x1e   : > { %p2918_p11 = scmp.ne.s32.totalorder %s3993_s2, %s2917_s7  ;;  %p2924_p3 = scmp.lt.u32.totalorder %s2917_s7, %s3993_s2 }
  0x20   : > { %p2920_p13 = pnand %p2919_p12, %p2918_p11 }
  0x22   : > { %p2921_p0 = pneg %p2920_p13 }
  0x24   : > { %p2926_p5 = pnand %p2924_p3, %p2921_p0 }
  0x26   : > { %2929 = shalt.err (!%p2926_p5)
}
  0x27   : > { %s2930_s12 = scalar_lea.vmem %s179_s29, 1024  ;;  %p2938_p2 = scmp.lt.s32.totalorder %s179_s29, %s179_s29 }
  0x28   : > { %p2931_p7 = scmp.ne.s32.totalorder %s179_s29, %s2930_s12  ;;  %p2939_p6 = scmp.lt.s32.totalorder %s2930_s12, %s2930_s12 }
  0x2a   : > { %p2933_p9 = pnand %p2931_p7, %p2919_p12  ;;  %p2940_p4 = por %p2939_p6, %p2938_p2 }
  0x2c   : > { %p2934_p1 = pneg %p2933_p9 }
  0x2e   : > { %p2941_p8 = pnand %p2940_p4, %p2934_p1 }
  0x30   : > { %2944 = shalt.err (!%p2941_p8)
}
  0x31   : > { %s3972_s13 = smov 128   ;;  %s3974_s14 = smov 8  }
  0x32   : > { %2826 = dma.hbm_to_vmem [thread:$0]  (!%p3216_p10), %s3993_s2, 1024, %s179_s29, [#allocation6], %s3972_s13, %s3972_s13, %s3974_s14  }
  0x33   : > { %s32_s5 = sadd.s32 1, %s3103_s20  ;;  %s35_s6 = sadd.s32 1, %s3107_s21 }
  0x34   : > { %p33_p1 = scmp.ge.s32.totalorder %s32_s5, 2  ;;  %s44_s7 = sadd.s32 1, %s3091_s17 }
  0x35   : > { %p51_p2 = scmp.ne.s32.totalorder %s3091_s17, %s3087_s16  ;;  %p52_p4 = scmp.eq.s32.totalorder %s3111_s22, 0 }
  0x36   : > { %s4029_s5 = smov (%p33_p1, %s32_s5), 0  ;;  %s4031_s6 = smov (!%p33_p1, %s35_s6), %s3107_s21 }
  0x37   : > { %3994 = sst [smem:[#allocation15_spill]] %s4029_s5  ;;  %s40_s30 = ssub.s32 %s3103_s20, %s4029_s5 }
  0x38   : > { %p37_p6 = scmp.ge.s32.totalorder %s4031_s6, 2  ;;  %p3995_p8 = scmp.eq.s32.totalorder %s3189_s23, 3 }
  0x39   : > { %p3256_p10 = por %p52_p4, %p51_p2  ;;  %p2839_p12 = scmp.lt.s32.totalorder %s3111_s22, 4 }
  0x3a   : > { %p3252_p11 = por %p3995_p8, %p51_p2  ;;  %s4033_s6 = smov (%p37_p6, %s4031_s6), 0 }
  0x3b   : > { %3998 = sst [smem:[#allocation16_spill]] %s4033_s6  ;;  %s3264_s9 = sand.u32 1, %s3091_s17  }
  0x3c   : > { %s2235_s10 = sshll.u32 %s3103_s20, 4  ;;  %s39_s11 = ssub.s32 %s3107_s21, %s4033_s6 }
  0x3d   : > { %s41_s12 = sor.u32 %s40_s30, %s39_s11  ;;  %s2213_s24 = sshll.u32 %s3264_s9, 7 }
  0x3e   : > { %p42_p13 = scmp.eq.s32.totalorder %s41_s12, 0  ;;  %s2216_s28 = sshll.u32 %s3107_s21, 5 }
  0x3f   : > { %s199_s13 = scalar_lea.vmem [#allocation2], %s2213_s24  ;;  %s206_s5 = sadd.s32 %s2235_s10, %s2216_s28 }
  0x40   : > { %s209_s14 = sshll.u32 %s199_s13, 4  ;;  %s2217_s26 = sshll.u32 %s206_s5, 7  ;;  %s3274_s14 = int_to_ptr.vmem [resolvable:$true] %s209_s14 }
  0x41   : > { %s3272_s2 = scalar_select %p42_p13, %s3091_s17, %s44_s7  }
  0x42   : > { %p3280_p0 = pnand %p2839_p12, %p3256_p10  ;;  %s4001_s0 = sld [smem:[#allocation20_spill]] }
  0x43   : > { %3999 = sst [smem:[#allocation17_spill]] %s3272_s2  ;;  %s196_s7 = scalar_lea.sflag [#allocation3], %s3264_s9 }
  0x44   : > { %p2947_p5 = pneg %p3280_p0 }
  0x48   : > { %s3287_s30 = scalar_lea.hbm %s4001_s0, %s2217_s26  ;;  %s2950_s6 = scalar_lea.hbm %s4001_s0, 8192 }
  0x49   : > { %s2945_s5 = scalar_lea.hbm %s3287_s30, 2048  ;;  %p2951_p1 = scmp.lt.u32.totalorder %s3287_s30, %s4001_s0 }
  0x4a   : > { %p2946_p3 = scmp.ne.s32.totalorder %s3287_s30, %s2945_s5  ;;  %p2952_p2 = scmp.lt.u32.totalorder %s2950_s6, %s2945_s5 }
  0x4b   : > { %p2954_p6 = scmp.lt.u32.totalorder %s2945_s5, %s3287_s30 }
  0x4c   : > { %p2948_p7 = pnand %p2947_p5, %p2946_p3  ;;  %p2953_p4 = por %p2952_p2, %p2951_p1 }
  0x4e   : > { %p2949_p9 = pneg %p2948_p7  ;;  %p2955_p8 = por %p2954_p6, %p2953_p4 }
  0x50   : > { %p2956_p10 = pnand %p2955_p8, %p2949_p9 }
  0x52   : > { %2959 = shalt.err (!%p2956_p10)
}
  0x53   : > { %s2960_s11 = scalar_lea.vmem %s3274_s14, 2048  ;;  %s3116_s12 = smov [#allocation2]  }
  0x54   : > { %p2961_p12 = scmp.ne.s32.totalorder %s3274_s14, %s2960_s11  ;;  %s2965_s24 = sshll.u32 %s3116_s12, 4  ;;  %s2966_s24 = int_to_ptr.vmem [resolvable:$false] %s2965_s24 }
  0x55   : > { %s2967_s28 = scalar_lea.vmem %s2966_s24, 4096  ;;  %p2968_p7 = scmp.lt.s32.totalorder %s3274_s14, %s2966_s24 }
  0x56   : > { %p2963_p13 = pnand %p2961_p12, %p2947_p5  ;;  %p2969_p1 = scmp.lt.s32.totalorder %s2967_s28, %s2960_s11 }
  0x58   : > { %p2964_p3 = pneg %p2963_p13  ;;  %p2970_p2 = por %p2969_p1, %p2968_p7 }
  0x5a   : > { %p2971_p4 = pnand %p2970_p2, %p2964_p3 }
  0x5c   : > { %2974 = shalt.err (!%p2971_p4)
}
  0x5d   : > { %s4002_s5 = smov 8   ;;  %s4003_s29 = smov 128  }
  0x5e   : > { %2830 = dma.hbm_to_vmem [thread:$0]  (!%p3280_p0), %s3287_s30, 2048, %s3274_s14, %s196_s7, %s4003_s29, %s4003_s29, %s4002_s5  }
  0x5f   : > { %s2218_s4 = sshll.u32 %s3264_s9, 5  ;;  %s2219_s6 = sshll.u32 %s3103_s20, 2 }
  0x60   : > { %s2220_s26 = sshll.u32 %s3107_s21, 3  ;;  %s223_s11 = scalar_lea.vmem [#allocation5], %s2218_s4 }
  0x61   : > { %s229_s10 = sadd.s32 %s2220_s26, %s2219_s6  ;;  %s232_s12 = sshll.u32 %s223_s11, 4  ;;  %s3324_s12 = int_to_ptr.vmem [resolvable:$true] %s232_s12 }
  0x62   : > { %s2221_s24 = sshll.u32 %s229_s10, 7  ;;  %s4004_s2 = sand.u32 1, %s3111_s22  }
  0x63   : > { %s3329_s0 = scalar_lea.hbm %s3965_s1, %s2221_s24  ;;  %s3333_s14 = scalar_lea.sflag [#allocation6], %s4004_s2 }
  0x64   : > { %s2975_s9 = scalar_lea.hbm %s3329_s0, 512  ;;  %s2980_s4 = scalar_lea.hbm %s3965_s1, 2048 }
  0x65   : > { %p2976_p9 = scmp.ne.s32.totalorder %s3329_s0, %s2975_s9  ;;  %p2981_p10 = scmp.lt.u32.totalorder %s3329_s0, %s3965_s1 }
  0x66   : > { %p2982_p12 = scmp.lt.u32.totalorder %s2980_s4, %s2975_s9  ;;  %p2984_p3 = scmp.lt.u32.totalorder %s2975_s9, %s3329_s0 }
  0x67   : > { %p2978_p6 = pnand %p2976_p9, %p2947_p5 }
  0x68   : > { %p2983_p13 = por %p2982_p12, %p2981_p10 }
  0x69   : > { %p2979_p8 = pneg %p2978_p6 }
  0x6a   : > { %p2985_p7 = por %p2984_p3, %p2983_p13 }
  0x6c   : > { %p2986_p1 = pnand %p2985_p7, %p2979_p8 }
  0x6e   : > { %2989 = shalt.err (!%p2986_p1)
}
  0x6f   : > { %s2990_s2 = scalar_lea.vmem %s3324_s12, 512  ;;  %s3117_s26 = smov [#allocation5]  }
  0x70   : > { %p2991_p2 = scmp.ne.s32.totalorder %s3324_s12, %s2990_s2  ;;  %s2995_s10 = sshll.u32 %s3117_s26, 4  ;;  %s2996_s10 = int_to_ptr.vmem [resolvable:$false] %s2995_s10 }
  0x71   : > { %s2997_s11 = scalar_lea.vmem %s2996_s10, 1024  ;;  %p2998_p6 = scmp.lt.s32.totalorder %s3324_s12, %s2996_s10 }
  0x72   : > { %p2993_p4 = pnand %p2991_p2, %p2947_p5  ;;  %p2999_p10 = scmp.lt.s32.totalorder %s2997_s11, %s2990_s2 }
  0x74   : > { %p2994_p9 = pneg %p2993_p4  ;;  %p3000_p12 = por %p2999_p10, %p2998_p6 }
  0x76   : > { %p3001_p13 = pnand %p3000_p12, %p2994_p9 }
  0x78   : > { %3004 = shalt.err (!%p3001_p13)
}
  0x79   : > { %2833 = dma.hbm_to_vmem [thread:$0]  (!%p3280_p0), %s3329_s0, 512, %s3324_s12, %s3333_s14, %s4003_s29, %s4003_s29, %s4002_s5  }
  0x7a   : > { %p4005_p5 = scmp.ne.s32.totalorder %s3991_s27, 0 }
  0x7c   : > { %244 = sbr.rel (%p4005_p5) target bundleno = 488 (0x1e8), region = 36 }
  0x83   : > { %s3365_s24 = sand.u32 1, %s3087_s16   ;;  %p4006_p8 = scmp.ne.s32.totalorder %s3988_s25, 0 }
  0x84   : > { %s2223_s28 = sshll.u32 %s3365_s24, 7  ;;  %s247_s9 = scalar_lea.sflag [#allocation3], %s3365_s24 }
  0x85   : > { %s3371_s15 = scalar_lea.vmem [#allocation2], %s2223_s28 }
  0x86   : > { %3066 = dma.done.wait (%p4006_p8), %s247_s9, 2048  }
  0x87   : > { %3068 = vsyncadd (%p4006_p8), %s247_s9, 4294965248  ;;  %s255_s0 = sand.u32 1, %s3189_s23   ;;  %s2224_s27 = sshll.u32 %s3365_s24, 5 }
  0x88   : > { %s256_s5 = scalar_lea.sflag [#allocation6], %s255_s0  ;;  %s3379_s29 = scalar_lea.vmem [#allocation5], %s2224_s27 }
  0x89   : > { %3070 = dma.done.wait (%p4006_p8), %s256_s5, 512  }
  0x8a   : > { %3072 = vsyncadd (%p4006_p8), %s256_s5, 4294966784  ;;  %p4007_p0 = scmp.eq.s32.totalorder %s3189_s23, 0 }
  0x8c   : > { %3074 = dma.done.wait (%p4007_p0), [#allocation6], 1024   ;;  %p4008_p3 = pmov %p4007_p0 }
  0x8d   : > { %v312_v0 = vld [vmem:[#allocation7] sm:$0xff]  ;;  %v313_v1 = vld [vmem:[#allocation7 + $0x8] sm:$0xff]  ;;  %v3389_v2 = vld [vmem:[#allocation7 + $0x10] sm:$0xff]  ;;  %vm327_vm0 = vcmask 523264   ;;  %s3843_s12 = scalar_lea.vmem [#allocation8], %s2223_s28  ;;  %s2236_s14 = sshll.u32 %s3095_s18, 4 }
  0x8e   : > { %3076 = vsyncadd (%p4008_p3), [#allocation6], 4294966272  ;;  %v377_v3 = vand.u32 4294901760, %v312_v0  ;;  %v380_v4 = vand.u32 4294901760, %v313_v1  ;;  %v3391_v5 = vld [vmem:[#allocation7 + $0x18] sm:$0xff]  ;;  %v383_v6 = vand.u32 4294901760, %v3389_v2 }
  0x8f   : > { %v3394_v7 = vld [vmem:[#allocation7 + $0x20] sm:$0xff]  ;;  %v3396_v8 = vld [vmem:[#allocation7 + $0x28] sm:$0xff]  ;;  %v386_v9 = vand.u32 4294901760, %v3391_v5  ;;  %v3401_v12 = vld [vmem:[#allocation7 + $0x30] sm:$0xff]  ;;  %s2231_s30 = sshll.u32 %s3099_s19, 5  ;;  %s2083_s19 = sshll.u32 %s3843_s12, 4  ;;  %s3908_s19 = int_to_ptr.vmem [resolvable:$true] %s2083_s19 }
  0x90   : > { %v389_v10 = vand.u32 4294901760, %v3394_v7  ;;  %v392_v11 = vand.u32 4294901760, %v3396_v8  ;;  %v3403_v13 = vld [vmem:[#allocation7 + $0x38] sm:$0xff]  ;;  %v296_v14 = vld [vmem:[%s3371_s15] sm:$0xff]  ;;  %v3406_v15 = vpack.c.bf16 %v380_v4, %v377_v3  ;;  %v395_v16 = vand.u32 4294901760, %v3401_v12  ;;  %v297_v19 = vld [vmem:[%s3371_s15 + $0x8] sm:$0xff]  ;;  %s2080_s7 = sadd.s32 %s2236_s14, %s2231_s30 }
  0x91   : > { %v398_v17 = vand.u32 4294901760, %v3403_v13  ;;  %v329_v18 = vsel %vm327_vm0, %v296_v14, 0  ;;  %v298_v20 = vld [vmem:[%s3371_s15 + $0x10] sm:$0xff]  ;;  %v299_v21 = vld [vmem:[%s3371_s15 + $0x18] sm:$0xff]  ;;  %v3418_v22 = vpack.c.bf16 %v386_v9, %v383_v6  ;;  %v332_v25 = vsel %vm327_vm0, %v297_v19, 0  ;;  %v300_v26 = vld [vmem:[%s3371_s15 + $0x20] sm:$0xff] }
  0x92   : > { %v3424_v23 = vpack.c.bf16 %v392_v11, %v389_v10  ;;  %v3426_v24 = vand.u32 4294901760, %v329_v18  ;;  %2622 = vmatprep.subr.bf16.mxu1 %v3406_v15  ;;  %2670 = vmatprep.subr.bf16.mxu0 %v3406_v15  ;;  %v3438_v28 = vand.u32 4294901760, %v332_v25  ;;  %v3440_v29 = vsub.f32 %v312_v0, %v377_v3  ;;  %v301_v31 = vld [vmem:[%s3371_s15 + $0x28] sm:$0xff]  ;;  %v302_v60 = vld [vmem:[%s3371_s15 + $0x30] sm:$0xff]  ;;  %v303_v61 = vld [vmem:[%s3371_s15 + $0x38] sm:$0xff]  ;;  %s2232_s18 = sshll.u32 %s2080_s7, 7 }
  0x93   : > { %v3436_v27 = vpack.c.bf16 %v398_v17, %v395_v16  ;;  %v3442_v30 = vsub.f32 %v313_v1, %v380_v4  ;;  %2624 = vmatpush3.bf16.msra.mxu1 %v3406_v15  ;;  %2672 = vmatpush3.bf16.msra.mxu0 %v3406_v15  ;;  %v335_v33 = vsel %vm327_vm0, %v298_v20, 0  ;;  %v338_v34 = vsel %vm327_vm0, %v299_v21, 0  ;;  %v304_v21 = vld [vmem:[%s3371_s15 + $0x40] sm:$0xff]  ;;  %s4014_s6 = sld [smem:[#allocation22_spill]]  ;;  %s2067_s26 = scalar_lea.sflag [#allocation4], %s3365_s24 }
  0x94   : > { %v3448_v32 = vsub.f32 %v329_v18, %v3426_v24  ;;  %v341_v35 = vsel %vm327_vm0, %v300_v26, 0  ;;  %2626 = vmatprep.subr.bf16.mxu1 %v3418_v22  ;;  %2674 = vmatprep.subr.bf16.mxu0 %v3418_v22  ;;  %v3456_v36 = vsub.f32 %v332_v25, %v3438_v28  ;;  %v612_v37 = vand.u32 4294901760, %v3440_v29  ;;  %s3005_s10 = scalar_lea.vmem %s3908_s19, 2048  ;;  %s3120_s11 = smov [#allocation8]  }
  0x95   : > { %v619_v38 = vand.u32 4294901760, %v3442_v30  ;;  %v3460_v39 = vand.u32 4294901760, %v335_v33  ;;  %v3463_v41 = vand.u32 4294901760, %v338_v34  ;;  %v3465_v42 = vand.u32 4294901760, %v341_v35  ;;  %p3006_p7 = scmp.ne.s32.totalorder %s3908_s19, %s3005_s10  ;;  %s3009_s28 = sshll.u32 %s3120_s11, 4  ;;  %s3010_s28 = int_to_ptr.vmem [resolvable:$false] %s3009_s28 }
  0x96   : > { %v451_v40 = vand.u32 4294901760, %v3448_v32  ;;  %v344_v43 = vsel %vm327_vm0, %v301_v31, 0  ;;  %v461_v44 = vand.u32 4294901760, %v3456_v36  ;;  %v613_v45 = vsub.f32 %v3440_v29, %v612_v37  ;;  %s3011_s9 = scalar_lea.vmem %s3010_s28, 4096  ;;  %p3012_p4 = scmp.lt.s32.totalorder %s3908_s19, %s3010_s28 }
  0x97   : > { %v620_v46 = vsub.f32 %v3442_v30, %v619_v38  ;;  %v3471_v47 = vpack.c.bf16 %v619_v38, %v612_v37  ;;  %2628 = vmatpush3.bf16.msra.mxu1 %v3418_v22  ;;  %2676 = vmatpush3.bf16.msra.mxu0 %v3418_v22  ;;  %v3477_v49 = vsub.f32 %v335_v33, %v3460_v39  ;;  %v3482_v51 = vand.u32 4294901760, %v344_v43  ;;  %v305_v37 = vld [vmem:[%s3371_s15 + $0x48] sm:$0xff]  ;;  %p3007_p1 = pnand %p3006_p7, %p3252_p11  ;;  %p3013_p9 = scmp.lt.s32.totalorder %s3011_s9, %s3005_s10 }
  0x98   : > { %v452_v48 = vsub.f32 %v3448_v32, %v451_v40  ;;  %v3480_v50 = vsub.f32 %v338_v34, %v3463_v41  ;;  %2630 = vmatprep.subr.bf16.mxu1 %v3424_v23  ;;  %2678 = vmatprep.subr.bf16.mxu0 %v3424_v23  ;;  %v462_v52 = vsub.f32 %v3456_v36, %v461_v44  ;;  %v614_v53 = vand.u32 4294901760, %v613_v45 }
  0x99   : > { %v621_v54 = vand.u32 4294901760, %v620_v46  ;;  %v3490_v55 = vsub.f32 %v341_v35, %v3465_v42  ;;  %2517 = vmatprep.mubr.f32.mxu0 %v451_v40  ;;  %v471_v57 = vand.u32 4294901760, %v3477_v49  ;;  %v3495_v59 = vsub.f32 %v344_v43, %v3482_v51  ;;  %s3906_s2 = scalar_lea.hbm %s4014_s6, %s2232_s18  ;;  %p3008_p2 = pneg %p3007_p1 }
  0x9a   : > { %v453_v56 = vand.u32 4294901760, %v452_v48  ;;  %v481_v58 = vand.u32 4294901760, %v3480_v50  ;;  %v463_v62 = vand.u32 4294901760, %v462_v52  ;;  %v3503_v1 = vsub.f32 %v3389_v2, %v383_v6  ;;  %p3014_p6 = por %p3013_p9, %p3012_p4 }
  0x9b   : > { %v2637_v63 = vpack.c.bf16 %v621_v54, %v614_v53  ;;  %v491_v0 = vand.u32 4294901760, %v3490_v55  ;;  %2632 = vmatpush3.bf16.msra.mxu1 %v3424_v23  ;;  %2680 = vmatpush3.bf16.msra.mxu0 %v3424_v23  ;;  %v472_v3 = vsub.f32 %v3477_v49, %v471_v57  ;;  %v501_v14 = vand.u32 4294901760, %v3495_v59  ;;  %v306_v54 = vld [vmem:[%s3371_s15 + $0x50] sm:$0xff] }
  0x9c   : > { %v3511_v4 = vsub.f32 %v3480_v50, %v481_v58  ;;  %v3517_v18 = vsub.f32 %v3391_v5, %v386_v9  ;;  %2634 = vmatprep.subr.bf16.mxu1 %v3436_v27  ;;  %2682 = vmatprep.subr.bf16.mxu0 %v3436_v27  ;;  %v626_v6 = vand.u32 4294901760, %v3503_v1  ;;  %v347_v19 = vsel %vm327_vm0, %v302_v60, 0  ;;  %p3015_p10 = pnand %p3014_p6, %p3008_p2 }
  0x9d   : > { %v3524_v2 = vsub.f32 %v3490_v55, %v491_v0  ;;  %v350_v20 = vsel %vm327_vm0, %v303_v61, 0  ;;  %2397 = vmatprep.mubr.f32.mxu1 %v453_v56  ;;  %v473_v5 = vand.u32 4294901760, %v472_v3  ;;  %v3534_v25 = vsub.f32 %v3495_v59, %v501_v14 }
  0x9e   : > { %v483_v9 = vand.u32 4294901760, %v3511_v4  ;;  %v633_v26 = vand.u32 4294901760, %v3517_v18  ;;  %v627_v33 = vsub.f32 %v3503_v1, %v626_v6  ;;  %v3539_v34 = vand.u32 4294901760, %v347_v19 }
  0x9f   : > { %v493_v31 = vand.u32 4294901760, %v3524_v2  ;;  %v3541_v35 = vand.u32 4294901760, %v350_v20  ;;  %2636 = vmatpush3.bf16.msra.mxu1 %v3436_v27  ;;  %2684 = vmatpush3.bf16.msra.mxu0 %v3436_v27  ;;  %v503_v38 = vand.u32 4294901760, %v3534_v25  ;;  %v353_v45 = vsel %vm327_vm0, %v304_v21, 0  ;;  %v307_v21 = vld [vmem:[%s3371_s15 + $0x58] sm:$0xff] }
  0xa0   : > { %v634_v40 = vsub.f32 %v3517_v18, %v633_v26  ;;  %v2689_v43 = vpack.c.bf16 %v633_v26, %v626_v6  ;;  %2638 = vmatprep.subr.bf16.mxu1 %v2637_v63  ;;  %2686 = vmatprep.subr.bf16.mxu0 %v3471_v47  ;;  %v628_v46 = vand.u32 4294901760, %v627_v33  ;;  %v3551_v48 = vsub.f32 %v347_v19, %v3539_v34  ;;  %v308_v33 = vld [vmem:[%s3371_s15 + $0x60] sm:$0xff] }
  0xa1   : > { %v3554_v52 = vsub.f32 %v350_v20, %v3541_v35  ;;  %v3556_v53 = vand.u32 4294901760, %v353_v45  ;;  %v356_v60 = vsel %vm327_vm0, %v305_v37, 0  ;;  %v3563_v61 = vsub.f32 %v3394_v7, %v389_v10 }
  0xa2   : > { %v635_v56 = vand.u32 4294901760, %v634_v40  ;;  %v3568_v3 = vsub.f32 %v3396_v8, %v392_v11  ;;  %2398 = vmatmul.mubr.f32.vlgmr.msra.gmra.mrb[0].mxu1 %v463_v62  ;;  %2518 = vmatmul.mubr.f32.vlgmr.msra.gmra.mrb[0].mxu0 %v461_v44  ;;  %v511_v4 = vand.u32 4294901760, %v3551_v48  ;;  %v3577_v19 = vand.u32 4294901760, %v356_v60 }
  0xa3   : > { %v521_v2 = vand.u32 4294901760, %v3554_v52  ;;  %v3575_v6 = vsub.f32 %v353_v45, %v3556_v53  ;;  %2640 = vmatpush3.bf16.msra.mxu1 %v2637_v63  ;;  %2400 = vmatprep.mubr.f32.mxu1 %v473_v5  ;;  %v640_v8 = vand.u32 4294901760, %v3563_v61  ;;  %v359_v11 = vsel %vm327_vm0, %v306_v54, 0  ;;  %v309_v54 = vld [vmem:[%s3371_s15 + $0x68] sm:$0xff] }
  0xa4   : > { %v2641_v7 = vpack.c.bf16 %v635_v56, %v628_v46  ;;  %v647_v10 = vand.u32 4294901760, %v3568_v3  ;;  %2520 = vmatprep.mubr.f32.mxu0 %v471_v57  ;;  %2688 = vmatpush3.bf16.msra.mxu0 %v3471_v47  ;;  %v512_v44 = vsub.f32 %v3551_v48, %v511_v4  ;;  %v3589_v20 = vsub.f32 %v356_v60, %v3577_v19 }
  0xa5   : > { %v522_v62 = vsub.f32 %v3554_v52, %v521_v2  ;;  %v3981_v63 = vand.u32 4294901760, %v3575_v6  ;;  %2690 = vmatprep.subr.bf16.mxu0 %v2689_v43  ;;  %v641_v5 = vsub.f32 %v3563_v61, %v640_v8  ;;  %v3594_v26 = vand.u32 4294901760, %v359_v11 }
  0xa6   : > { %2642 = vmatprep.subr.bf16.mxu1 %v2641_v7  ;;  %v648_v57 = vsub.f32 %v3568_v3, %v647_v10  ;;  %v2693_v47 = vpack.c.bf16 %v647_v10, %v640_v8  ;;  %2401 = vmatmul.mubr.f32.gmra.mrb[2].mxu1 %v483_v9  ;;  %v513_v37 = vand.u32 4294901760, %v512_v44  ;;  %v541_v46 = vand.u32 4294901760, %v3589_v20 }
  0xa7   : > { %2521 = vmatmul.mubr.f32.gmra.mrb[2].mxu0 %v481_v58  ;;  %v523_v40 = vand.u32 4294901760, %v522_v62  ;;  %v532_v45 = vsub.f32 %v3575_v6, %v3981_v63  ;;  %2403 = vmatprep.mubr.f32.mxu1 %v493_v31  ;;  %v642_v56 = vand.u32 4294901760, %v641_v5  ;;  %v3607_v9 = vsub.f32 %v359_v11, %v3594_v26  ;;  %v310_v62 = vld [vmem:[%s3371_s15 + $0x70] sm:$0xff] }
  0xa8   : > { %2523 = vmatprep.mubr.f32.mxu0 %v491_v0  ;;  %v649_v60 = vand.u32 4294901760, %v648_v57  ;;  %v362_v58 = vsel %vm327_vm0, %v307_v21, 0  ;;  %2644 = vmatpush3.bf16.msra.mxu1 %v2641_v7  ;;  %v542_v10 = vsub.f32 %v3589_v20, %v541_v46  ;;  %v365_v31 = vsel %vm327_vm0, %v308_v33, 0  ;;  %v311_v33 = vld [vmem:[%s3371_s15 + $0x78] sm:$0xff] }
  0xa9   : > { %2692 = vmatpush3.bf16.msra.mxu0 %v2689_v43  ;;  %v533_v8 = vand.u32 4294901760, %v532_v45  ;;  %v3611_v44 = vand.u32 4294901760, %v362_v58  ;;  %v551_v0 = vand.u32 4294901760, %v3607_v9  ;;  %v3616_v5 = vand.u32 4294901760, %v365_v31 }
  0xaa   : > { %v2645_v63 = vpack.c.bf16 %v649_v60, %v642_v56  ;;  %2694 = vmatprep.subr.bf16.mxu0 %v2693_v47  ;;  %v368_v11 = vsel %vm327_vm0, %v309_v54, 0  ;;  %2404 = vmatmul.mubr.f32.gmra.mrb[4].mxu1 %v503_v38  ;;  %v543_v43 = vand.u32 4294901760, %v542_v10  ;;  %v3631_v57 = vsub.f32 %v3401_v12, %v395_v16 }
  0xab   : > { %2524 = vmatmul.mubr.f32.gmra.mrb[4].mxu0 %v501_v14  ;;  %v3624_v7 = vsub.f32 %v362_v58, %v3611_v44  ;;  %v3626_v21 = vand.u32 4294901760, %v368_v11  ;;  %2406 = vmatprep.mubr.f32.mxu1 %v513_v37  ;;  %v552_v25 = vsub.f32 %v3607_v9, %v551_v0  ;;  %v3636_v38 = vsub.f32 %v365_v31, %v3616_v5 }
  0xac   : > { %2526 = vmatprep.mubr.f32.mxu0 %v511_v4  ;;  %v3641_v14 = vsub.f32 %v3403_v13, %v398_v17  ;;  %v371_v45 = vsel %vm327_vm0, %v310_v62, 0  ;;  %2646 = vmatprep.subr.bf16.mxu1 %v2645_v63  ;;  %v654_v4 = vand.u32 4294901760, %v3631_v57  ;;  %v374_v17 = vsel %vm327_vm0, %v311_v33, 0 }
  0xad   : > { %4009 = vst [vmem:[#allocation18_spill] sm:$0xff] %v3624_v7  ;;  %4010 = vst [vmem:[#allocation19_spill] sm:$0xff] %v3636_v38  ;;  %2696 = vmatpush3.bf16.msra.mxu0 %v2693_v47  ;;  %v561_v12 = vand.u32 4294901760, %v3624_v7  ;;  %v3646_v16 = vsub.f32 %v368_v11, %v3626_v21  ;;  %v3649_v37 = vand.u32 4294901760, %v371_v45  ;;  %2648 = vmatpush3.bf16.msra.mxu1 %v2645_v63  ;;  %v553_v54 = vand.u32 4294901760, %v552_v25 }
  0xae   : > { %v571_v56 = vand.u32 4294901760, %v3636_v38  ;;  %v661_v13 = vand.u32 4294901760, %v3641_v14  ;;  %2407 = vmatmul.mubr.f32.gmra.mrb[6].mxu1 %v523_v40  ;;  %v655_v58 = vsub.f32 %v3631_v57, %v654_v4  ;;  %v4011_v63 = vand.u32 4294901760, %v3575_v6 }
  0xaf   : > { %2527 = vmatmul.mubr.f32.gmra.mrb[6].mxu0 %v521_v2  ;;  %v562_v47 = vsub.f32 %v3624_v7, %v561_v12  ;;  %v581_v60 = vand.u32 4294901760, %v3646_v16  ;;  %v3660_v10 = vsub.f32 %v371_v45, %v3649_v37  ;;  %2409 = vmatprep.mubr.f32.mxu1 %v533_v8  ;;  %v3666_v11 = vand.u32 4294901760, %v374_v17 }
  0xb0   : > { %2529 = vmatprep.mubr.f32.mxu0 %v4011_v63  ;;  %v572_v31 = vsub.f32 %v3636_v38, %v571_v56  ;;  %v662_v40 = vsub.f32 %v3641_v14, %v661_v13  ;;  %v2697_v62 = vpack.c.bf16 %v661_v13, %v654_v4  ;;  %v656_v2 = vand.u32 4294901760, %v655_v58 }
  0xb1   : > { %v591_v33 = vand.u32 4294901760, %v3660_v10  ;;  %v3670_v7 = vsub.f32 %v374_v17, %v3666_v11  ;;  %v563_v8 = vand.u32 4294901760, %v562_v47  ;;  %v582_v45 = vsub.f32 %v3646_v16, %v581_v60 }
  0xb2   : > { %v663_v25 = vand.u32 4294901760, %v662_v40  ;;  %2698 = vmatprep.subr.bf16.mxu0 %v2697_v62  ;;  %2410 = vmatmul.mubr.f32.gmra.mrb[8].mxu1 %v543_v43  ;;  %v573_v63 = vand.u32 4294901760, %v572_v31  ;;  %v2653_v58 = vpack.c.bf16 %v3442_v30, %v3440_v29  ;;  %v2657_v29 = vpack.c.bf16 %v3517_v18, %v3503_v1 }
  0xb3   : > { %2530 = vmatmul.mubr.f32.gmra.mrb[8].mxu0 %v541_v46  ;;  %2412 = vmatprep.mubr.f32.mxu1 %v553_v54  ;;  %v592_v4 = vsub.f32 %v3660_v10, %v591_v33  ;;  %v601_v13 = vand.u32 4294901760, %v3670_v7  ;;  %v583_v46 = vand.u32 4294901760, %v582_v45  ;;  %v2661_v30 = vpack.c.bf16 %v3568_v3, %v3563_v61 }
  0xb4   : > { %2532 = vmatprep.mubr.f32.mxu0 %v551_v0  ;;  %v2649_v38 = vpack.c.bf16 %v663_v25, %v656_v2  ;;  %2700 = vmatpush3.bf16.msra.mxu0 %v2697_v62 }
  0xb5   : > { %2702 = vmatprep.subr.bf16.mxu0 %v3406_v15  ;;  %v602_v43 = vsub.f32 %v3670_v7, %v601_v13  ;;  %v593_v0 = vand.u32 4294901760, %v592_v4 }
  0xb6   : > { %2650 = vmatprep.subr.bf16.mxu1 %v2649_v38  ;;  %2413 = vmatmul.mubr.f32.gmra.mrb[10].mxu1 %v563_v8 }
  0xb7   : > { %2533 = vmatmul.mubr.f32.gmra.mrb[10].mxu0 %v561_v12  ;;  %2415 = vmatprep.mubr.f32.mxu1 %v573_v63  ;;  %v603_v54 = vand.u32 4294901760, %v602_v43 }
  0xb8   : > { %2535 = vmatprep.mubr.f32.mxu0 %v571_v56  ;;  %2652 = vmatpush3.bf16.msra.mxu1 %v2649_v38 }
  0xb9   : > { %2654 = vmatprep.subr.bf16.mxu1 %v2653_v58 }
  0xba   : > { %2416 = vmatmul.mubr.f32.gmra.mrb[12].mxu1 %v583_v46 }
  0xbb   : > { %2536 = vmatmul.mubr.f32.gmra.mrb[12].mxu0 %v581_v60  ;;  %2418 = vmatprep.mubr.f32.mxu1 %v593_v0 }
  0xbc   : > { %2538 = vmatprep.mubr.f32.mxu0 %v591_v33 }
  0xbe   : > { %2419 = vmatmul.mubr.f32.gmra.mrb[14].mxu1 %v603_v54 }
  0xbf   : > { %2539 = vmatmul.mubr.f32.gmra.mrb[14].mxu0 %v601_v13  ;;  %2437 = vmatprep.mubr.f32.mxu1 %v3426_v24  ;;  %v1561_v13 = vld [vmem:[%s3379_s29 + $0x18] sm:$0xff] }
  0xc0   : > { %2557 = vmatprep.mubr.f32.mxu0 %v3426_v24 }
  0xc2   : > { %2438 = vmatmul.mubr.f32.vlgmr.msra.gmra.mrb[0].mxu1 %v3438_v28 }
  0xc3   : > { %2558 = vmatmul.mubr.f32.vlgmr.msra.gmra.mrb[0].mxu0 %v3438_v28  ;;  %2656 = vmatpush3.bf16.msra.mxu1 %v2653_v58 }
  0xc4   : > { %2440 = vmatprep.mubr.f32.mxu1 %v3460_v39  ;;  %2560 = vmatprep.mubr.f32.mxu0 %v3460_v39 }
  0xc5   : > { %2704 = vmatpush3.bf16.msra.mxu0 %v3406_v15  ;;  %2658 = vmatprep.subr.bf16.mxu1 %v2657_v29  ;;  %v2665_v15 = vpack.c.bf16 %v3641_v14, %v3631_v57 }
  0xc6   : > { %2706 = vmatprep.subr.bf16.mxu0 %v3418_v22  ;;  %2441 = vmatmul.mubr.f32.gmra.mrb[2].mxu1 %v3463_v41 }
  0xc7   : > { %2561 = vmatmul.mubr.f32.gmra.mrb[2].mxu0 %v3463_v41  ;;  %2443 = vmatprep.mubr.f32.mxu1 %v3465_v42 }
  0xc8   : > { %2563 = vmatprep.mubr.f32.mxu0 %v3465_v42  ;;  %2660 = vmatpush3.bf16.msra.mxu1 %v2657_v29 }
  0xc9   : > { %2708 = vmatpush3.bf16.msra.mxu0 %v3418_v22  ;;  %2662 = vmatprep.subr.bf16.mxu1 %v2661_v30  ;;  %v4012_v22 = vld [vmem:[#allocation18_spill] sm:$0xff] }
  0xca   : > { %2710 = vmatprep.subr.bf16.mxu0 %v3424_v23  ;;  %2444 = vmatmul.mubr.f32.gmra.mrb[4].mxu1 %v3482_v51 }
  0xcb   : > { %2564 = vmatmul.mubr.f32.gmra.mrb[4].mxu0 %v3482_v51  ;;  %2446 = vmatprep.mubr.f32.mxu1 %v3539_v34 }
  0xcc   : > { %2566 = vmatprep.mubr.f32.mxu0 %v3539_v34  ;;  %2664 = vmatpush3.bf16.msra.mxu1 %v2661_v30 }
  0xcd   : > { %2712 = vmatpush3.bf16.msra.mxu0 %v3424_v23  ;;  %2666 = vmatprep.subr.bf16.mxu1 %v2665_v15  ;;  %v4013_v23 = vld [vmem:[#allocation19_spill] sm:$0xff] }
  0xce   : > { %2714 = vmatprep.subr.bf16.mxu0 %v3436_v27  ;;  %2447 = vmatmul.mubr.f32.gmra.mrb[6].mxu1 %v3541_v35 }
  0xcf   : > { %2567 = vmatmul.mubr.f32.gmra.mrb[6].mxu0 %v3541_v35  ;;  %2449 = vmatprep.mubr.f32.mxu1 %v3556_v53 }
  0xd0   : > { %2569 = vmatprep.mubr.f32.mxu0 %v3556_v53  ;;  %2668 = vmatpush3.bf16.msra.mxu1 %v2665_v15 }
  0xd1   : > { %2716 = vmatpush3.bf16.msra.mxu0 %v3436_v27 }
  0xd2   : > { %2450 = vmatmul.mubr.f32.gmra.mrb[8].mxu1 %v3577_v19 }
  0xd3   : > { %2570 = vmatmul.mubr.f32.gmra.mrb[8].mxu0 %v3577_v19  ;;  %2452 = vmatprep.mubr.f32.mxu1 %v3594_v26 }
  0xd4   : > { %2572 = vmatprep.mubr.f32.mxu0 %v3594_v26 }
  0xd6   : > { %2453 = vmatmul.mubr.f32.gmra.mrb[10].mxu1 %v3611_v44 }
  0xd7   : > { %2573 = vmatmul.mubr.f32.gmra.mrb[10].mxu0 %v3611_v44  ;;  %2455 = vmatprep.mubr.f32.mxu1 %v3616_v5 }
  0xd8   : > { %2575 = vmatprep.mubr.f32.mxu0 %v3616_v5 }
  0xda   : > { %2456 = vmatmul.mubr.f32.gmra.mrb[12].mxu1 %v3626_v21 }
  0xdb   : > { %2576 = vmatmul.mubr.f32.gmra.mrb[12].mxu0 %v3626_v21  ;;  %2458 = vmatprep.mubr.f32.mxu1 %v3649_v37 }
  0xdc   : > { %2578 = vmatprep.mubr.f32.mxu0 %v3649_v37 }
  0xde   : > { %2459 = vmatmul.mubr.f32.gmra.mrb[14].mxu1 %v3666_v11 }
  0xdf   : > { %2579 = vmatmul.mubr.f32.gmra.mrb[14].mxu0 %v3666_v11  ;;  %2477 = vmatprep.mubr.f32.mxu1 %v3448_v32 }
  0xe0   : > { %2597 = vmatprep.mubr.f32.mxu0 %v3426_v24  ;;  %v3118_v24 = vmov 1966171168  }
  0xe1   : > { %v1568_v27 = vunpack.c.l.s4 %v3118_v24 }
  0xe2   : > { %2478 = vmatmul.mubr.f32.vlgmr.msra.gmra.mrb[0].mxu1 %v3456_v36 }
  0xe3   : > { %2598 = vmatmul.mubr.f32.vlgmr.msra.gmra.mrb[0].mxu0 %v3438_v28  ;;  %2480 = vmatprep.mubr.f32.mxu1 %v3477_v49  ;;  %v1570_v28 = vlaneseq  ;;  %v1569_v32 = vunpack.c.0.s8 %v1568_v27  ;;  %v1559_v49 = vld [vmem:[%s3379_s29 + $0x8] sm:$0xff]  ;;  %v1713_v27 = vcombine.high %v1561_v13, %v1561_v13 }
  0xe4   : > { %2600 = vmatprep.mubr.f32.mxu0 %v3460_v39  ;;  %v1558_v39 = vld [vmem:[%s3379_s29] sm:$0xff] }
  0xe5   : > { %v1571_v36 = vshrl.u32 %v1570_v28, 7 }
  0xe6   : > { %2481 = vmatmul.mubr.f32.gmra.mrb[2].mxu1 %v3480_v50 }
  0xe7   : > { %2601 = vmatmul.mubr.f32.gmra.mrb[2].mxu0 %v3463_v41  ;;  %2483 = vmatprep.mubr.f32.mxu1 %v3490_v55  ;;  %v1566_v41 = vcombine.high %v1558_v39, %v1558_v39  ;;  %v1615_v55 = vcombine.high %v1559_v49, %v1559_v49 }
  0xe8   : > { %2603 = vmatprep.mubr.f32.mxu0 %v3465_v42  ;;  %v3757_v42 = vsub.s32 %v1569_v32, %v1571_v36 }
  0xea   : > { %2484 = vmatmul.mubr.f32.gmra.mrb[4].mxu1 %v3495_v59  ;;  %v1580_v50 = vrot.slane %v1566_v41, %v3757_v42  ;;  %v1629_v18 = vrot.slane %v1615_v55, %v3757_v42  ;;  %v1622_v3 = vrot.slane %v1559_v49, %v3757_v42 }
  0xeb   : > { %2604 = vmatmul.mubr.f32.gmra.mrb[4].mxu0 %v3482_v51  ;;  %2486 = vmatprep.mubr.f32.mxu1 %v3551_v48  ;;  %v1573_v51 = vrot.slane %v1558_v39, %v3757_v42  ;;  %v1560_v48 = vld [vmem:[%s3379_s29 + $0x10] sm:$0xff] }
  0xec   : > { %2606 = vmatprep.mubr.f32.mxu0 %v3539_v34  ;;  %v1582_v59 = vcombine.high %v1580_v50, %v1580_v50  ;;  %v1596_v34 = vrot.slane %v1580_v50, %v3757_v42  ;;  %v1631_v61 = vcombine.high %v1629_v18, %v1629_v18  ;;  %v1630_v38 = vcombine.high %v1622_v3, %v1622_v3 }
  0xed   : > { %v1581_v1 = vcombine.high %v1573_v51, %v1573_v51  ;;  %v1671_v40 = vrot.slane %v1560_v48, %v3757_v42  ;;  %v1638_v2 = vrot.slane %v1622_v3, %v3757_v42 }
  0xee   : > { %2487 = vmatmul.mubr.f32.gmra.mrb[6].mxu1 %v3554_v52  ;;  %v1589_v52 = vrot.slane %v1573_v51, %v3757_v42  ;;  %v1659_v57 = vrot.slane %v1631_v61, %v3757_v42  ;;  %v1652_v33 = vrot.slane %v1630_v38, %v3757_v42  ;;  %v1720_v61 = vrot.slane %v1561_v13, %v3757_v42 }
  0xef   : > { %2607 = vmatmul.mubr.f32.gmra.mrb[6].mxu0 %v3541_v35  ;;  %2489 = vmatprep.mubr.f32.mxu1 %v3575_v6  ;;  %v1610_v35 = vrot.slane %v1582_v59, %v3757_v42  ;;  %v3769_v6 = vsub.s32 0, %v1571_v36  ;;  %v1679_v0 = vcombine.high %v1671_v40, %v1671_v40  ;;  %v1660_v30 = vcombine.high %v1638_v2, %v1638_v2 }
  0xf0   : > { %2609 = vmatprep.mubr.f32.mxu0 %v3556_v53  ;;  %v1603_v53 = vrot.slane %v1581_v1, %v3757_v42  ;;  %v1662_v15 = vcombine.high %v1652_v33, %v1652_v33  ;;  %v1687_v50 = vrot.slane %v1671_v40, %v3757_v42 }
  0xf1   : > { %v1781_v14 = vrot.slane %v1596_v34, %v3769_v6  ;;  %v1785_v12 = vrot.slane %v1610_v35, %v3769_v6  ;;  %v1765_v47 = vrot.slane %v1589_v52, %v3769_v6  ;;  %v1817_v43 = vrot.slane %v1659_v57, %v3769_v6 }
  0xf2   : > { %2490 = vmatmul.mubr.f32.gmra.mrb[8].mxu1 %v3589_v20  ;;  %v1769_v60 = vrot.slane %v1603_v53, %v3769_v6  ;;  %v1801_v39 = vrot.slane %v1652_v33, %v3769_v6  ;;  %v1701_v51 = vrot.slane %v1679_v0, %v3757_v42  ;;  %v1805_v59 = vrot.slane %v1660_v30, %v3769_v6 }
  0xf3   : > { %2610 = vmatmul.mubr.f32.gmra.mrb[8].mxu0 %v3577_v19  ;;  %2492 = vmatprep.mubr.f32.mxu1 %v3607_v9  ;;  %v3119_v19 = vmov 1983009808   ;;  %v1612_v9 = vcombine.high %v1596_v34, %v1596_v34  ;;  %v1907_v8 = vcombine.low %v1781_v14, %v1785_v12  ;;  %v1809_v1 = vrot.slane %v1662_v15, %v3769_v6 }
  0xf4   : > { %2612 = vmatprep.mubr.f32.mxu0 %v3594_v26  ;;  %v1893_v20 = vunpack.c.l.s4 %v3119_v19  ;;  %v1664_v26 = vcombine.high %v1560_v48, %v1560_v48  ;;  %v1890_v4 = vcombine.low %v1765_v47, %v1769_v60  ;;  %v3808_v48 = vld [vmem:[%s3967_s3] ss:$0 sm:$0xff]  ;;  %v1829_v60 = vrot.slane %v1687_v50, %v3769_v6 }
  0xf5   : > { %v1789_v56 = vrot.slane %v1612_v9, %v3769_v6  ;;  %v1833_v40 = vrot.slane %v1701_v51, %v3769_v6  ;;  %v3836_v15 = vrot.slane %v1720_v61, %v3757_v42 }
  0xf6   : > { %2493 = vmatmul.mubr.f32.gmra.mrb[10].mxu1 %v4012_v22 }
  0xf7   : > { %2613 = vmatmul.mubr.f32.gmra.mrb[10].mxu0 %v3611_v44  ;;  %2495 = vmatprep.mubr.f32.mxu1 %v4013_v23  ;;  %v1614_v44 = vcombine.high %v1610_v35, %v1610_v35  ;;  %v1727_v35 = vrot.slane %v1713_v27, %v3757_v42  ;;  %v1958_v27 = vcombine.low %v1829_v60, %v1833_v40 }
  0xf8   : > { %2615 = vmatprep.mubr.f32.mxu0 %v3616_v5  ;;  %v1611_v5 = vcombine.high %v1589_v52, %v1589_v52 }
  0xf9   : > { %v1793_v17 = vrot.slane %v1614_v44, %v3769_v6 }
  0xfa   : > { %2496 = vmatmul.mubr.f32.gmra.mrb[12].mxu1 %v3646_v16  ;;  %v1894_v16 = vunpack.c.0.s8 %v1893_v20  ;;  %v1709_v20 = vcombine.high %v1687_v50, %v1687_v50 }
  0xfb   : > { %2616 = vmatmul.mubr.f32.gmra.mrb[12].mxu0 %v3626_v21  ;;  %2498 = vmatprep.mubr.f32.mxu1 %v3660_v10  ;;  %v1645_v21 = vrot.slane %v1629_v18, %v3757_v42  ;;  %v1773_v10 = vrot.slane %v1611_v5, %v3769_v6  ;;  %v1908_v63 = vcombine.low %v1789_v56, %v1793_v17 }
  0xfc   : > { %2618 = vmatprep.mubr.f32.mxu0 %v3649_v37  ;;  %v1678_v37 = vrot.slane %v1664_v26, %v3757_v42  ;;  %v3785_v25 = vsub.s32 %v1894_v16, %v1571_v36  ;;  %v1797_v36 = vrot.slane %v1638_v2, %v3769_v6  ;;  %v1711_v26 = vcombine.high %v1701_v51, %v1701_v51 }
  0xfd   : > { %v1661_v62 = vcombine.high %v1645_v21, %v1645_v21  ;;  %v1813_v46 = vrot.slane %v1645_v21, %v3769_v6  ;;  %v1729_v56 = vcombine.high %v1727_v35, %v1727_v35 }
  0xfe   : > { %2499 = vmatmul.mubr.f32.gmra.mrb[14].mxu1 %v3670_v7  ;;  %v1613_v7 = vcombine.high %v1603_v53, %v1603_v53  ;;  %v1680_v45 = vcombine.high %v1678_v37, %v1678_v37  ;;  %v1915_v22 = vrot.slane %v1907_v8, %v3785_v25  ;;  %v1694_v23 = vrot.slane %v1678_v37, %v3757_v42 }
  0xff   : > { %2619 = vmatmul.mubr.f32.gmra.mrb[14].mxu0 %v3666_v11  ;;  %v1663_v11 = vcombine.high %v1659_v57, %v1659_v57  ;;  %v1821_v54 = vrot.slane %v1661_v62, %v3769_v6  ;;  %v1922_v28 = vrot.slane %v1908_v63, %v3785_v25  ;;  %v1898_v32 = vrot.slane %v1890_v4, %v3785_v25 }
 0x100   : > { %v1777_v31 = vrot.slane %v1613_v7, %v3769_v6  ;;  %v1708_v24 = vrot.slane %v1680_v45, %v3757_v42  ;;  %v1941_v49 = vcombine.low %v1813_v46, %v1817_v43  ;;  %v1710_v18 = vcombine.high %v1694_v23, %v1694_v23 }
 0x101   : > { %v1825_v29 = vrot.slane %v1663_v11, %v3769_v6  ;;  %v1923_v52 = vcombine.low %v1915_v22, %v1922_v28  ;;  %v1924_v53 = vcombine.low %v1797_v36, %v1801_v39  ;;  %v1925_v7 = vcombine.low %v1805_v59, %v1809_v1 }
 0x102   : > { %v1891_v58 = vcombine.low %v1773_v10, %v1777_v31  ;;  %v1712_v34 = vcombine.high %v1708_v24, %v1708_v24  ;;  %v1949_v19 = vrot.slane %v1941_v49, %v3785_v25  ;;  %v1845_v21 = vrot.slane %v1694_v23, %v3769_v6 }
 0x103   : > { %v1942_v55 = vcombine.low %v1821_v54, %v1825_v29  ;;  %v1849_v57 = vrot.slane %v1708_v24, %v3769_v6  ;;  %v1853_v16 = vrot.slane %v1710_v18, %v3769_v6  ;;  %v1932_v47 = vrot.slane %v1924_v53, %v3785_v25 }
 0x104   : > { %v1905_v41 = vrot.slane %v1891_v58, %v3785_v25  ;;  %v1857_v37 = vrot.slane %v1712_v34, %v3769_v6  ;;  %v1728_v10 = vcombine.high %v1720_v61, %v1720_v61  ;;  %v1837_v62 = vrot.slane %v1709_v20, %v3769_v6 }
 0x105   : > { %v1956_v5 = vrot.slane %v1942_v55, %v3785_v25  ;;  %v1841_v11 = vrot.slane %v1711_v26, %v3769_v6  ;;  %v1939_v45 = vrot.slane %v1925_v7, %v3785_v25  ;;  %v3825_v63 = vcombine.low %v1845_v21, %v1849_v57 }
 0x106   : > { %v1906_v3 = vcombine.low %v1898_v32, %v1905_v41  ;;  %v3828_v4 = vrot.slane %v1727_v35, %v3757_v42  ;;  %v1976_v0 = vcombine.low %v1853_v16, %v1857_v37  ;;  %v3832_v54 = vrot.slane %v1729_v56, %v3757_v42 }
 0x107   : > { %v3839_v22 = vrot.slane %v1728_v10, %v3757_v42  ;;  %v1957_v24 = vcombine.low %v1949_v19, %v1956_v5  ;;  %v1959_v28 = vcombine.low %v1837_v62, %v1841_v11  ;;  %v1940_v41 = vcombine.low %v1932_v47, %v1939_v45 }
 0x108   : > { %v1983_v42 = vrot.slane %v3825_v63, %v3785_v25  ;;  %v1759_v49 = vcombine.high %v3828_v4, %v3828_v4  ;;  %v1990_v1 = vrot.slane %v1976_v0, %v3785_v25  ;;  %v1761_v18 = vcombine.high %v3832_v54, %v3832_v54 }
 0x109   : > { %v1758_v53 = vcombine.high %v3836_v15, %v3836_v15  ;;  %v1760_v61 = vcombine.high %v3839_v22, %v3839_v22  ;;  %v1966_v19 = vrot.slane %v1958_v27, %v3785_v25  ;;  %v1973_v20 = vrot.slane %v1959_v28, %v3785_v25 }
 0x10a   : > { %v1877_v26 = vrot.slane %v3828_v4, %v3769_v6  ;;  %v1881_v5 = vrot.slane %v3832_v54, %v3769_v6  ;;  %v1885_v7 = vrot.slane %v1759_v49, %v3769_v6  ;;  %v1861_v21 = vrot.slane %v3836_v15, %v3769_v6 }
 0x10b   : > { %v1889_v16 = vrot.slane %v1761_v18, %v3769_v6  ;;  %v1865_v37 = vrot.slane %v3839_v22, %v3769_v6  ;;  %v1869_v47 = vrot.slane %v1758_v53, %v3769_v6  ;;  %v1873_v60 = vrot.slane %v1760_v61, %v3769_v6 }
 0x10c   : > { %v1991_v11 = vcombine.low %v1983_v42, %v1990_v1  ;;  %v2009_v4 = vcombine.low %v1877_v26, %v1881_v5 }
 0x10e   : > { %v2017_v27 = vrot.slane %v2009_v4, %v3785_v25 }
 0x1b5   : > { %v2479_v9 = vpop.f32.mrb[0].mxu1 }
 0x1b6   : > { %v2599_v44 = vpop.f32.mrb[0].mxu0  ;;  %v2717_v38 = vadd.f32 %v2479_v9, %v3808_v48  ;;  %v894_v14 = vpop.f32.mrb[1].mxu1 }
 0x1b7   : > { %v1464_v12 = vpop.f32.mrb[1].mxu0  ;;  %v2719_v17 = vadd.f32 %v3808_v48, %v894_v14 }
 0x1b8   : > { %v2718_v31 = vadd.f32 %v2717_v38, %v2599_v44 }
 0x1b9   : > { %v2720_v2 = vadd.f32 %v2719_v17, %v1464_v12  ;;  %v2482_v33 = vpop.f32.mrb[2].mxu1 }
 0x1ba   : > { %v2602_v8 = vpop.f32.mrb[2].mxu0  ;;  %v2035_v13 = vadd.f32 %v2718_v31, %v1923_v52  ;;  %v2721_v58 = vadd.f32 %v2482_v33, %v3808_v48  ;;  %v908_v46 = vpop.f32.mrb[3].mxu1 }
 0x1bb   : > { %v1476_v43 = vpop.f32.mrb[3].mxu0  ;;  %v2034_v29 = vadd.f32 %v2720_v2, %v1906_v3  ;;  %v2723_v30 = vadd.f32 %v3808_v48, %v908_v46  ;;  %v1974_v2 = vcombine.low %v1966_v19, %v1973_v20  ;;  %v1992_v46 = vcombine.low %v1861_v21, %v1865_v37 }
 0x1bc   : > { %2051 = vst [vmem:[%s3843_s12 + $0x8] sm:$0xff] %v2035_v13  ;;  %v2722_v23 = vadd.f32 %v2721_v58, %v2602_v8  ;;  %v2010_v13 = vcombine.low %v1885_v7, %v1889_v16 }
 0x1bd   : > { %2050 = vst [vmem:[%s3843_s12] sm:$0xff] %v2034_v29  ;;  %v2724_v32 = vadd.f32 %v2723_v30, %v1476_v43  ;;  %v2485_v36 = vpop.f32.mrb[4].mxu1  ;;  %v1993_v43 = vcombine.low %v1869_v47, %v1873_v60 }
 0x1be   : > { %v2605_v39 = vpop.f32.mrb[4].mxu0  ;;  %v2037_v50 = vadd.f32 %v2722_v23, %v1923_v52  ;;  %v2725_v51 = vadd.f32 %v2485_v36, %v3808_v48  ;;  %v922_v55 = vpop.f32.mrb[5].mxu1  ;;  %v2024_v28 = vrot.slane %v2010_v13, %v3785_v25 }
 0x1bf   : > { %v1488_v59 = vpop.f32.mrb[5].mxu0  ;;  %v2036_v34 = vadd.f32 %v2724_v32, %v1906_v3  ;;  %v2727_v35 = vadd.f32 %v3808_v48, %v922_v55 }
 0x1c0   : > { %2053 = vst [vmem:[%s3843_s12 + $0x18] sm:$0xff] %v2037_v50  ;;  %v2726_v52 = vadd.f32 %v2725_v51, %v2605_v39  ;;  %v2000_v39 = vrot.slane %v1992_v46, %v3785_v25  ;;  %v2025_v1 = vcombine.low %v2017_v27, %v2024_v28 }
 0x1c1   : > { %2052 = vst [vmem:[%s3843_s12 + $0x10] sm:$0xff] %v2036_v34  ;;  %v2728_v9 = vadd.f32 %v2727_v35, %v1488_v59  ;;  %v2488_v3 = vpop.f32.mrb[6].mxu1 }
 0x1c2   : > { %v2608_v44 = vpop.f32.mrb[6].mxu0  ;;  %v2039_v57 = vadd.f32 %v2726_v52, %v1957_v24  ;;  %v2729_v38 = vadd.f32 %v2488_v3, %v3808_v48  ;;  %v936_v14 = vpop.f32.mrb[7].mxu1 }
 0x1c3   : > { %v1500_v12 = vpop.f32.mrb[7].mxu0  ;;  %v2038_v56 = vadd.f32 %v2728_v9, %v1940_v41  ;;  %v2731_v17 = vadd.f32 %v3808_v48, %v936_v14 }
 0x1c4   : > { %2055 = vst [vmem:[%s3843_s12 + $0x28] sm:$0xff] %v2039_v57  ;;  %v2730_v10 = vadd.f32 %v2729_v38, %v2608_v44 }
 0x1c5   : > { %2054 = vst [vmem:[%s3843_s12 + $0x20] sm:$0xff] %v2038_v56  ;;  %v2732_v31 = vadd.f32 %v2731_v17, %v1500_v12  ;;  %v2491_v40 = vpop.f32.mrb[8].mxu1 }
 0x1c6   : > { %v2611_v62 = vpop.f32.mrb[8].mxu0  ;;  %v2041_v33 = vadd.f32 %v2730_v10, %v1957_v24  ;;  %v2733_v8 = vadd.f32 %v2491_v40, %v3808_v48  ;;  %v950_v45 = vpop.f32.mrb[9].mxu1 }
 0x1c7   : > { %v1512_v63 = vpop.f32.mrb[9].mxu0  ;;  %v2040_v58 = vadd.f32 %v2732_v31, %v1940_v41  ;;  %v2735_v6 = vadd.f32 %v3808_v48, %v950_v45  ;;  %v2007_v41 = vrot.slane %v1993_v43, %v3785_v25 }
 0x1c8   : > { %2057 = vst [vmem:[%s3843_s12 + $0x38] sm:$0xff] %v2041_v33  ;;  %v2734_v0 = vadd.f32 %v2733_v8, %v2611_v62 }
 0x1c9   : > { %2056 = vst [vmem:[%s3843_s12 + $0x30] sm:$0xff] %v2040_v58  ;;  %v2736_v54 = vadd.f32 %v2735_v6, %v1512_v63  ;;  %v2494_v29 = vpop.f32.mrb[10].mxu1  ;;  %v2008_v25 = vcombine.low %v2000_v39, %v2007_v41 }
 0x1ca   : > { %v2614_v30 = vpop.f32.mrb[10].mxu0  ;;  %v2043_v15 = vadd.f32 %v2734_v0, %v1991_v11  ;;  %v2737_v22 = vadd.f32 %v2494_v29, %v3808_v48  ;;  %v964_v23 = vpop.f32.mrb[11].mxu1 }
 0x1cb   : > { %v1524_v24 = vpop.f32.mrb[11].mxu0  ;;  %v2042_v32 = vadd.f32 %v2736_v54, %v1974_v2  ;;  %v2739_v36 = vadd.f32 %v3808_v48, %v964_v23 }
 0x1cc   : > { %2059 = vst [vmem:[%s3843_s12 + $0x48] sm:$0xff] %v2043_v15  ;;  %v2738_v42 = vadd.f32 %v2737_v22, %v2614_v30 }
 0x1cd   : > { %2058 = vst [vmem:[%s3843_s12 + $0x40] sm:$0xff] %v2042_v32  ;;  %v2740_v49 = vadd.f32 %v2739_v36, %v1524_v24  ;;  %v2497_v50 = vpop.f32.mrb[12].mxu1 }
 0x1ce   : > { %v2617_v51 = vpop.f32.mrb[12].mxu0  ;;  %v2045_v55 = vadd.f32 %v2738_v42, %v1991_v11  ;;  %v2741_v59 = vadd.f32 %v2497_v50, %v3808_v48  ;;  %v978_v18 = vpop.f32.mrb[13].mxu1 }
 0x1cf   : > { %v1536_v34 = vpop.f32.mrb[13].mxu0  ;;  %v2044_v35 = vadd.f32 %v2740_v49, %v1974_v2  ;;  %v2743_v53 = vadd.f32 %v3808_v48, %v978_v18 }
 0x1d0   : > { %2061 = vst [vmem:[%s3843_s12 + $0x58] sm:$0xff] %v2045_v55  ;;  %v2742_v61 = vadd.f32 %v2741_v59, %v2617_v51 }
 0x1d1   : > { %2060 = vst [vmem:[%s3843_s12 + $0x50] sm:$0xff] %v2044_v35  ;;  %v2744_v52 = vadd.f32 %v2743_v53, %v1536_v34  ;;  %v2500_v19 = vpop.f32.mrb[14].mxu1 }
 0x1d2   : > { %v2620_v20 = vpop.f32.mrb[14].mxu0  ;;  %v2047_v26 = vadd.f32 %v2742_v61, %v2025_v1  ;;  %v2745_v9 = vadd.f32 %v2500_v19, %v3808_v48  ;;  %v992_v3 = vpop.f32.mrb[15].mxu1 }
 0x1d3   : > { %v1548_v44 = vpop.f32.mrb[15].mxu0  ;;  %v2046_v5 = vadd.f32 %v2744_v52, %v2008_v25  ;;  %v2747_v7 = vadd.f32 %v3808_v48, %v992_v3 }
 0x1d4   : > { %2063 = vst [vmem:[%s3843_s12 + $0x68] sm:$0xff] %v2047_v26  ;;  %v2746_v21 = vadd.f32 %v2745_v9, %v2620_v20 }
 0x1d5   : > { %2062 = vst [vmem:[%s3843_s12 + $0x60] sm:$0xff] %v2046_v5  ;;  %v2748_v57 = vadd.f32 %v2747_v7, %v1548_v44 }
 0x1d6   : > { %v2049_v38 = vadd.f32 %v2746_v21, %v2025_v1 }
 0x1d7   : > { %v2048_v14 = vadd.f32 %v2748_v57, %v2008_v25 }
 0x1d8   : > { %2065 = vst [vmem:[%s3843_s12 + $0x78] sm:$0xff] %v2049_v38 }
 0x1d9   : > { %2064 = vst [vmem:[%s3843_s12 + $0x70] sm:$0xff] %v2048_v14 }
 0x1da   : > { %3018 = shalt.err (!%p3015_p10)
}
 0x1db   : > { %s3019_s15 = scalar_lea.hbm %s3906_s2, 2048  ;;  %s3023_s5 = scalar_lea.hbm %s4014_s6, 8192 }
 0x1dc   : > { %p3020_p12 = scmp.ne.s32.totalorder %s3906_s2, %s3019_s15  ;;  %p3024_p8 = scmp.lt.u32.totalorder %s3906_s2, %s4014_s6 }
 0x1dd   : > { %p3025_p0 = scmp.lt.u32.totalorder %s3023_s5, %s3019_s15  ;;  %p3027_p7 = scmp.lt.u32.totalorder %s3019_s15, %s3906_s2 }
 0x1de   : > { %p3021_p13 = pnand %p3020_p12, %p3252_p11 }
 0x1df   : > { %p3026_p3 = por %p3025_p0, %p3024_p8 }
 0x1e0   : > { %p3022_p5 = pneg %p3021_p13 }
 0x1e1   : > { %p3028_p1 = por %p3027_p7, %p3026_p3 }
 0x1e3   : > { %p3029_p2 = pnand %p3028_p1, %p3022_p5 }
 0x1e5   : > { %3032 = shalt.err (!%p3029_p2)
}
 0x1e6   : > { %s3121_s25 = smov 128   ;;  %s3122_s12 = smov 8  }
 0x1e7   : > { %2821 = dma.vmem_to_hbm [thread:$0]  (%p3252_p11), %s3908_s19, 2048, %s3906_s2, %s2067_s26, %s3121_s25, %s3121_s25, %s3122_s12  }
 0x1e8 PF: > { %s4015_s14 = sld [smem:[#allocation13_spill]]  ;;  %s4016_s30 = sld [smem:[#allocation14_spill]] }
 0x1e9   : > { %p2841_p4 = scmp.ge.s32.totalorder %s3111_s22, 2 }
 0x1ee   : > { %s2098_s7 = sand.u32 1, %s4015_s14   ;;  %p4017_p9 = scmp.ne.s32.totalorder %s4016_s30, 0 }
 0x1ef   : > { %s2099_s18 = scalar_lea.sflag [#allocation4], %s2098_s7 }
 0x1f0   : > { %p2835_p6 = pnand %p2841_p4, %p4017_p9 }
 0x1f2   : > { %3078 = dma.done.wait (!%p2835_p6), %s2099_s18, 2048  }
 0x1f3   : > { %3080 = vsyncadd (!%p2835_p6), %s2099_s18, 4294965248  ;;  %s23_s22 = sadd.s32 1, %s3111_s22   ;;  %s4018_s4 = sld [smem:[#allocation17_spill]] }
 0x1f4   : > { %p20_p10 = scmp.ge.s32.totalorder %s23_s22, 6   ;;  %s4019_s8 = sld [smem:[#allocation15_spill]] }
 0x1f5   : > { %s4020_s24 = sld [smem:[#allocation16_spill]]  ;;  %s4021_s15 = smov %s3087_s16 }
 0x1f6   : > { %s4022_s16 = smov %s3091_s17  ;;  %s4024_s18 = smov %s3103_s20 }
 0x1f7   : > { %s4025_s19 = smov %s3107_s21  ;;  %22 = sbr.rel (!%p20_p10) target bundleno = 13 (0xd), region = 98 }
 0x1f9   : > { %s4023_s17 = smov %s4018_s4 }
 0x1fa   : > { %s4026_s20 = smov %s4019_s8 }
 0x1fb   : > { %s4027_s21 = smov %s4020_s24 }
 0x1fe   :  { %2104 = vsyncpa [#allocation3], 1 }
 0x1ff   :  { %2106 = vsyncpa [#allocation3 + $0x1], 1 }
 0x200   :  { %2107 = vsyncpa [#allocation6], 1 }
 0x201   :  { %2109 = vsyncpa [#allocation6 + $0x1], 1 }
 0x202   :  { %2110 = vsyncpa [#allocation4], 1 }
 0x203   :  { %2112 = vsyncpa [#allocation4 + $0x1], 1 }

</bundles_post_ra>
